<compile_context>
chip_gen: v7x
topology: tpu7x:2x2x1
jax: 0.10.0
libtpu: 0.0.40
codegen_flags: <defaults>
</compile_context>

<pallas_src>
import math

import jax
import jax.numpy as jnp
from jax.experimental import pallas as pl
from jax.experimental.pallas import tpu as pltpu

_MIB = 1024 * 1024
# Conservative per-core VMEM cap: safe on v7x (64 MiB physical) and leaves
# plenty of headroom on v5e/v6e (128 MiB).
_VMEM_BUDGET = 44 * _MIB
# Max bytes (counting possible double-buffering) for keeping the whole B
# operand resident in VMEM during phase 2.
_RESIDENT_B_BUDGET = 20 * _MIB


# ----------------------------------------------------------------------------
# Helpers
# ----------------------------------------------------------------------------
def _round_up(x, m):
    return ((x + m - 1) // m) * m


def _pick_tile(dim, preferred, align=128):
    """Pick (tile, padded_dim) with tile a multiple of `align`.

    Prefers tiles that divide the 128-aligned size so large operands (the
    adjacency) only pay the unavoidable 128-alignment padding.
    """
    base = _round_up(max(dim, 1), align)
    if base <= preferred:
        return base, base                       # one block covers the dim
    pref_units = max(preferred // align, 1)
    units = base // align
    for t in range(pref_units, 0, -1):
        tile = t * align
        if units % t == 0 and 2 * tile >= preferred:
            return tile, base                   # divides -> minimal padding
    return preferred, _round_up(dim, preferred)  # fallback: pad to tile


# ----------------------------------------------------------------------------
# Kernels
# ----------------------------------------------------------------------------
def _make_kernel(*, nk, tk, resident_b, has_bias):
    """Build a matmul(+bias) kernel.

    nk == 1     : single-shot dot, no accumulator scratch (2-D grid).
    nk  > 1     : f32 VMEM accumulator over grid axis 2 (P3 init/finalize).
    resident_b  : B ref holds the full (kp, tn) slab in VMEM; the k-block is
                  sliced out inside the kernel (B is DMA'd exactly once).
    """
    def b_block(b_ref, k):
        if not resident_b or nk == 1:
            return b_ref[...]
        start = pl.multiple_of(k * tk, tk)
        return b_ref[pl.ds(start, tk), :]

    if nk == 1:
        if has_bias:
            def kernel(a_ref, b_ref, bias_ref, o_ref):
                acc = jnp.dot(a_ref[...], b_ref[...],
                              preferred_element_type=jnp.float32)
                o_ref[...] = (acc + bias_ref[...]).astype(o_ref.dtype)
        else:
            def kernel(a_ref, b_ref, o_ref):
                o_ref[...] = jnp.dot(
                    a_ref[...], b_ref[...],
                    preferred_element_type=jnp.float32).astype(o_ref.dtype)
        return kernel

    if has_bias:
        def kernel(a_ref, b_ref, bias_ref, o_ref, acc_ref):
            k = pl.program_id(2)

            @pl.when(k == 0)
            def _():
                acc_ref[...] = jnp.zeros_like(acc_ref)

            acc_ref[...] += jnp.dot(a_ref[...], b_block(b_ref, k),
                                    preferred_element_type=jnp.float32)

            @pl.when(k == nk - 1)
            def _():
                o_ref[...] = (acc_ref[...] + bias_ref[...]).astype(o_ref.dtype)
    else:
        def kernel(a_ref, b_ref, o_ref, acc_ref):
            k = pl.program_id(2)

            @pl.when(k == 0)
            def _():
                acc_ref[...] = jnp.zeros_like(acc_ref)

            acc_ref[...] += jnp.dot(a_ref[...], b_block(b_ref, k),
                                    preferred_element_type=jnp.float32)

            @pl.when(k == nk - 1)
            def _():
                o_ref[...] = acc_ref[...].astype(o_ref.dtype)
    return kernel


# ----------------------------------------------------------------------------
# Tiled matmul wrapper
# ----------------------------------------------------------------------------
def _tiled_matmul(a, b, bias=None, *, out_dtype=None,
                  tm_pref=512, tn_pref=512, tk_pref=2048):
    """Padded, tiled `a @ b (+ bias)` on TPU via pallas_call."""
    m, k = a.shape
    k2, n = b.shape
    assert k == k2, (a.shape, b.shape)
    out_dtype = a.dtype if out_dtype is None else out_dtype

    tm, mp = _pick_tile(m, tm_pref)
    tn, np_ = _pick_tile(n, tn_pref)
    tk, kp = _pick_tile(k, tk_pref)

    a_p = a if (mp == m and kp == k) else jnp.pad(a, ((0, mp - m), (0, kp - k)))
    b_p = b if (kp == k and np_ == n) else jnp.pad(b, ((0, kp - k), (0, np_ - n)))

    nm, nn, nk = mp // tm, np_ // tn, kp // tk

    # Keep B fully resident in VMEM when the n grid is a single block and the
    # (worst-case double-buffered) slab fits the budget: B is then DMA'd from
    # HBM exactly once for the whole kernel.
    resident_b = (nn == 1 and
                  2 * kp * np_ * b_p.dtype.itemsize <= _RESIDENT_B_BUDGET)

    has_bias = bias is not None
    kernel = _make_kernel(nk=nk, tk=tk, resident_b=resident_b,
                          has_bias=has_bias)

    if nk == 1:
        grid = (nm, nn)
        a_spec = pl.BlockSpec((tm, kp), lambda i, j: (i, 0))
        b_spec = pl.BlockSpec((kp, tn), lambda i, j: (0, j))
        o_spec = pl.BlockSpec((tm, tn), lambda i, j: (i, j))
        bias_spec = pl.BlockSpec((1, tn), lambda i, j: (0, j))
        scratch = []
        dims = ("parallel", "parallel")
        a_block_k = kp
    else:
        grid = (nm, nn, nk)
        a_spec = pl.BlockSpec((tm, tk), lambda i, j, kk: (i, kk))
        if resident_b:
            b_spec = pl.BlockSpec((kp, tn), lambda i, j, kk: (0, j))
        else:
            b_spec = pl.BlockSpec((tk, tn), lambda i, j, kk: (kk, j))
        o_spec = pl.BlockSpec((tm, tn), lambda i, j, kk: (i, j))
        bias_spec = pl.BlockSpec((1, tn), lambda i, j, kk: (0, j))
        scratch = [pltpu.VMEM((tm, tn), jnp.float32)]
        dims = ("parallel", "parallel", "arbitrary")
        a_block_k = tk

    in_specs = [a_spec, b_spec]
    operands = [a_p, b_p]
    if has_bias:
        bias_p = bias if np_ == n else jnp.pad(bias, (0, np_ - n))
        operands.append(bias_p.reshape(1, np_).astype(jnp.float32))
        in_specs.append(bias_spec)

    # VMEM usage estimate -> per-call vmem_limit_bytes (capped for v7x).
    itm_a = a_p.dtype.itemsize
    itm_b = b_p.dtype.itemsize
    itm_o = jnp.dtype(out_dtype).itemsize
    b_block_bytes = (kp * tn if resident_b else a_block_k * 0 + tk * tn) * itm_b
    est = (2 * tm * a_block_k * itm_a
           + 2 * b_block_bytes
           + 2 * tm * tn * itm_o
           + (tm * tn * 4 if nk > 1 else 0)
           + (2 * tn * 4 if has_bias else 0))
    vmem_limit = int(min(max(32 * _MIB, est + 8 * _MIB), _VMEM_BUDGET))

    cost = pl.CostEstimate(
        flops=2 * mp * np_ * kp,
        transcendentals=0,
        bytes_accessed=(mp * kp * itm_a + kp * np_ * itm_b
                        + mp * np_ * itm_o),
    )

    out = pl.pallas_call(
        kernel,
        out_shape=jax.ShapeDtypeStruct((mp, np_), out_dtype),
        grid=grid,
        in_specs=in_specs,
        out_specs=o_spec,
        scratch_shapes=scratch,
        compiler_params=pltpu.CompilerParams(
            dimension_semantics=dims,
            vmem_limit_bytes=vmem_limit,
        ),
        cost_estimate=cost,
    )(*operands)

    if mp != m or np_ != n:
        out = out[:m, :n]
    return out


# ----------------------------------------------------------------------------
# GraphConvolution forward
# ----------------------------------------------------------------------------
def graph_convolution(x, adj, weight, bias=None, *,
                      compute_dtype=jnp.bfloat16):
    """GCN layer forward: adj @ (x @ weight) + bias.

    x:      [N, F_in]
    adj:    [N, N]
    weight: [F_in, F_out]
    bias:   [F_out] or None
    compute_dtype: operand dtype for the MXU (default bf16; accumulation is
                   always f32 inside the kernels). Pass None to keep the
                   input dtype (e.g. full f32).
    Note: with bf16 operands, `support` is stored in bf16 between the two
    matmuls (slight extra rounding vs a fused f32 reference; acceptable for
    GCN and it halves phase-2 HBM reads of support).
    """
    out_dtype = x.dtype
    if compute_dtype is not None:
        x = x.astype(compute_dtype)
        adj = adj.astype(compute_dtype)
        weight = weight.astype(compute_dtype)

    f_out = weight.shape[1]

    # Phase 1: support = x @ W  -- computed exactly once, no accumulator when
    # F_in fits a single k block (the common case).
    support = _tiled_matmul(x, weight, out_dtype=x.dtype,
                            tm_pref=512, tn_pref=512, tk_pref=2048)

    # Phase 2: out = adj @ support (+ bias fused in the kernel epilogue).
    # Force tn = full padded F_out so the j grid collapses to 1: the N^2
    # adjacency (dominant HBM read) is streamed exactly once, and `support`
    # stays fully resident in VMEM.
    tn_pref2 = min(_round_up(f_out, 128), 1024)
    out = _tiled_matmul(adj, support, bias=bias, out_dtype=out_dtype,
                        tm_pref=512, tn_pref=tn_pref2, tk_pref=2048)
    return out


# ----------------------------------------------------------------------------
# Self-test
# ----------------------------------------------------------------------------
if __name__ == "__main__":
    key = jax.random.PRNGKey(0)
    k_x, k_adj, k_w, k_b = jax.random.split(key, 4)

    # --- Test 1: module-sized shapes (N=8, 16 -> 32), with bias --------------
    N, F_IN, F_OUT = 8, 16, 32
    x = jax.random.normal(k_x, (N, F_IN), dtype=jnp.float32)
    adj = jax.random.uniform(k_adj, (N, N), dtype=jnp.float32)

    # Parameter init mirroring reset_parameters(): uniform(-stdv, stdv),
    # stdv = 1 / sqrt(out_features).
    stdv = 1.0 / math.sqrt(F_OUT)
    weight = jax.random.uniform(k_w, (F_IN, F_OUT), dtype=jnp.float32,
                                minval=-stdv, maxval=stdv)
    bias = jax.random.uniform(k_b, (F_OUT,), dtype=jnp.float32,
                              minval=-stdv, maxval=stdv)
    ref = adj @ (x @ weight) + bias

    # 1a: full-f32 operand path -> tight tolerance (verifies kernel machinery).
    out_f32 = jax.block_until_ready(
        graph_convolution(x, adj, weight, bias, compute_dtype=None))
    assert out_f32.shape == (N, F_OUT)
    assert jnp.allclose(out_f32, ref, atol=1e-4, rtol=1e-4)

    # 1b: default bf16 operand path (f32 accumulation) -> looser tolerance.
    out_bf = jax.block_until_ready(graph_convolution(x, adj, weight, bias))
    assert out_bf.shape == (N, F_OUT)
    assert out_bf.dtype == jnp.float32
    assert jnp.allclose(out_bf, ref, atol=5e-2, rtol=5e-2)

    # --- Test 2: non-aligned shapes, bias=None (padding + resident-B path) ---
    N2, F_IN2, F_OUT2 = 300, 96, 160
    k_x2, k_adj2, k_w2 = jax.random.split(jax.random.PRNGKey(1), 3)
    x2 = jax.random.normal(k_x2, (N2, F_IN2), dtype=jnp.float32)
    adj2 = jax.random.uniform(k_adj2, (N2, N2), dtype=jnp.float32)
    stdv2 = 1.0 / math.sqrt(F_OUT2)
    w2 = jax.random.uniform(k_w2, (F_IN2, F_OUT2), dtype=jnp.float32,
                            minval=-stdv2, maxval=stdv2)
    ref2 = adj2 @ (x2 @ w2)

    out2_f32 = jax.block_until_ready(
        graph_convolution(x2, adj2, w2, bias=None, compute_dtype=None))
    assert out2_f32.shape == (N2, F_OUT2)
    assert jnp.allclose(out2_f32, ref2, atol=1e-3, rtol=1e-3)

    out2_bf = jax.block_until_ready(
        graph_convolution(x2, adj2, w2, bias=None))
    assert out2_bf.shape == (N2, F_OUT2)
    assert jnp.allclose(out2_bf, ref2, atol=2.5e-1, rtol=5e-2)

    print("KERNEL_OK")
</pallas_src>

<mosaic_0001>
module attributes {stable_mosaic.version = 11 : i64} {
  func.func @kernel(%arg0: i32, %arg1: i32, %arg2: memref<128x128xf32, #tpu.memory_space<vmem>>, %arg3: memref<128x128xf32, #tpu.memory_space<vmem>>, %arg4: memref<128x128xf32, #tpu.memory_space<vmem>>) attributes {dimension_semantics = [#tpu.dimension_semantics<parallel>, #tpu.dimension_semantics<parallel>], iteration_bounds = array<i64: 1, 1>, scalar_prefetch = 0 : i64, scratch_operands = 0 : i64, tpu.core_type = #tpu.core_type<tc>, window_params = [{transform_indices = @transform_0, window_bounds = array<i64: 128, 128>}, {transform_indices = @transform_1, window_bounds = array<i64: 128, 128>}, {transform_indices = @transform_2, window_bounds = array<i64: 128, 128>}]} {
    %c0 = arith.constant 0 : index
    %c0_0 = arith.constant 0 : index
    %0 = vector.load %arg2[%c0, %c0_0] : memref<128x128xf32, #tpu.memory_space<vmem>>, vector<128x128xf32>
    %c0_1 = arith.constant 0 : index
    %c0_2 = arith.constant 0 : index
    %1 = vector.load %arg3[%c0_1, %c0_2] : memref<128x128xf32, #tpu.memory_space<vmem>>, vector<128x128xf32>
    %cst = arith.constant dense<0.000000e+00> : vector<128x128xf32>
    %2 = tpu.matmul %0, %1, %cst {dimension_numbers = #tpu.dot_dimension_numbers<[1], [0], [0], [1], [0, 0, 1, 1], [], []>} : vector<128x128xf32>, vector<128x128xf32>, vector<128x128xf32> -> vector<128x128xf32>
    %c0_3 = arith.constant 0 : index
    %c0_4 = arith.constant 0 : index
    %3 = vector.load %arg4[%c0_3, %c0_4] : memref<128x128xf32, #tpu.memory_space<vmem>>, vector<128x128xf32>
    tpu.vector_store %arg4[%c0_3, %c0_4], %2 {strides = array<i32>} : memref<128x128xf32, #tpu.memory_space<vmem>>, vector<128x128xf32>,
    return
  }
  func.func @transform_0(%arg0: i32, %arg1: i32) -> (i32, i32) {
    %c0_i32 = arith.constant 0 : i32
    %c0_i32_0 = arith.constant 0 : i32
    return %arg0, %c0_i32 : i32, i32
  }
  func.func @transform_1(%arg0: i32, %arg1: i32) -> (i32, i32) {
    %c0_i32 = arith.constant 0 : i32
    %c0_i32_0 = arith.constant 0 : i32
    return %c0_i32, %arg1 : i32, i32
  }
  func.func @transform_2(%arg0: i32, %arg1: i32) -> (i32, i32) {
    %c0_i32 = arith.constant 0 : i32
    return %arg0, %arg1 : i32, i32
  }
}

</mosaic_0001>

<bundles_post_ra>
// kernel: tpu_custom_call.1
= control target key start
LH: loop header
LB: loop body
LE: loop exit
PB: predicated region body
PF: predicated region fallthrough
CT: control target
= control target key end

     0   :  { %7 = vsyncpa [#allocation3], 0  ;;  %s529_s0 = inlined_call_operand.hbm [shape: f32[128,128], index: 0, kind: input, shape index: {}]   ;;  %s530_s1 = inlined_call_operand.hbm [shape: f32[128,128], index: 1, kind: input, shape index: {}]   ;;  %s531_s2 = inlined_call_operand.hbm [shape: f32[128,128], index: 2, kind: output, shape index: {}]  }
   0x1   :  { %8 = vsyncpa [#allocation6], 0 }
   0x2   :  { %9 = vsyncpa [#allocation4], 0  ;;  %s464_s9 = smov [#allocation2]   ;;  %s392_s13 = scalar_lea.hbm %s529_s0, 2048 }
   0x3   :  { %s15_s10 = sshll.u32 %s464_s9, 4  ;;  %p393_p0 = scmp.ne.s32.totalorder %s529_s0, %s392_s13  ;;  %s16_s10 = int_to_ptr.vmem [resolvable:$true] %s15_s10 }
   0x4   :  { %p396_p1 = scmp.lt.u32.totalorder %s392_s13, %s529_s0 }
   0x6   :  { %p398_p2 = pnand %p396_p1, %p393_p0 }
   0x8   :  { %401 = shalt.err (!%p398_p2)
}
   0x9   :  { %s402_s18 = scalar_lea.vmem %s16_s10, 2048  ;;  %p407_p4 = scmp.lt.s32.totalorder %s16_s10, %s16_s10 }
   0xa   :  { %p403_p3 = scmp.ne.s32.totalorder %s16_s10, %s402_s18  ;;  %p408_p5 = scmp.lt.s32.totalorder %s402_s18, %s402_s18 }
   0xc   :  { %p409_p6 = por %p408_p5, %p407_p4 }
   0xe   :  { %p410_p7 = pnand %p409_p6, %p403_p3 }
  0x10   :  { %413 = shalt.err (!%p410_p7)
}
  0x11   :  { %s465_s19 = smov 128   ;;  %s466_s20 = smov 8  }
  0x12   :  { %21 = dma.hbm_to_vmem [thread:$0]  %s529_s0, 2048, %s16_s10, [#allocation3], %s465_s19, %s465_s19, %s466_s20  }
  0x13   :  { %s467_s23 = smov [#allocation5]   ;;  %s414_s27 = scalar_lea.hbm %s530_s1, 2048 }
  0x14   :  { %s27_s24 = sshll.u32 %s467_s23, 4  ;;  %p415_p8 = scmp.ne.s32.totalorder %s530_s1, %s414_s27  ;;  %s28_s24 = int_to_ptr.vmem [resolvable:$true] %s27_s24 }
  0x15   :  { %p418_p9 = scmp.lt.u32.totalorder %s414_s27, %s530_s1 }
  0x17   :  { %p420_p10 = pnand %p418_p9, %p415_p8 }
  0x19   :  { %423 = shalt.err (!%p420_p10)
}
  0x1a   :  { %s424_s4 = scalar_lea.vmem %s28_s24, 2048  ;;  %p429_p12 = scmp.lt.s32.totalorder %s28_s24, %s28_s24 }
  0x1b   :  { %p425_p11 = scmp.ne.s32.totalorder %s28_s24, %s424_s4  ;;  %p430_p13 = scmp.lt.s32.totalorder %s424_s4, %s424_s4 }
  0x1d   :  { %p431_p0 = por %p430_p13, %p429_p12 }
  0x1f   :  { %p432_p1 = pnand %p431_p0, %p425_p11 }
  0x21   :  { %435 = shalt.err (!%p432_p1)
}
  0x22   :  { %33 = dma.hbm_to_vmem [thread:$0]  %s530_s1, 2048, %s28_s24, [#allocation6], %s465_s19, %s465_s19, %s466_s20  }
  0x23   :  { %458 = dma.done.wait [#allocation3], 2048  }
  0x24   :  { %459 = vsyncadd [#allocation3], 4294965248 }
  0x25   :  { %460 = dma.done.wait [#allocation6], 2048  }
  0x26   :  { %461 = vsyncadd [#allocation6], 4294965248  ;;  %v56_v0 = vld [vmem:[#allocation5] sm:$0xff]  ;;  %v57_v1 = vld [vmem:[#allocation5 + $0x8] sm:$0xff]  ;;  %s468_s1 = smov [#allocation7]  }
  0x27   :  { %v58_v2 = vld [vmem:[#allocation5 + $0x10] sm:$0xff]  ;;  %v339_v3 = vpack.c.bf16 %v57_v1, %v56_v0  ;;  %v59_v4 = vld [vmem:[#allocation5 + $0x18] sm:$0xff]  ;;  %v60_v6 = vld [vmem:[#allocation5 + $0x20] sm:$0xff]  ;;  %s238_s6 = sshll.u32 %s468_s1, 4  ;;  %s239_s6 = int_to_ptr.vmem [resolvable:$true] %s238_s6 }
  0x28   :  { %v343_v5 = vpack.c.bf16 %v59_v4, %v58_v2  ;;  %v61_v7 = vld [vmem:[#allocation5 + $0x28] sm:$0xff]  ;;  %v40_v9 = vld [vmem:[#allocation2] sm:$0xff]  ;;  %v62_v11 = vld [vmem:[#allocation5 + $0x30] sm:$0xff]  ;;  %s436_s7 = scalar_lea.vmem %s239_s6, 2048  ;;  %p441_p3 = scmp.lt.s32.totalorder %s239_s6, %s239_s6 }
  0x29   :  { %340 = vmatprep.subr.bf16.mxu0 %v339_v3  ;;  %371 = vmatprep.subr.bf16.mxu1 %v339_v3  ;;  %v347_v8 = vpack.c.bf16 %v61_v7, %v60_v6  ;;  %v48_v10 = vld [vmem:[#allocation2 + $0x40] sm:$0xff]  ;;  %v63_v12 = vld [vmem:[#allocation5 + $0x38] sm:$0xff]  ;;  %v65_v15 = vld [vmem:[#allocation5 + $0x48] sm:$0xff]  ;;  %p437_p2 = scmp.ne.s32.totalorder %s239_s6, %s436_s7  ;;  %p442_p4 = scmp.lt.s32.totalorder %s436_s7, %s436_s7 }
  0x2a   :  { %342 = vmatpush3.bf16.msra.mxu0 %v339_v3  ;;  %379 = vmatpush3.bf16.msra.mxu1 %v339_v3  ;;  %v351_v13 = vpack.c.bf16 %v63_v12, %v62_v11  ;;  %v64_v14 = vld [vmem:[#allocation5 + $0x40] sm:$0xff]  ;;  %v66_v17 = vld [vmem:[#allocation5 + $0x50] sm:$0xff]  ;;  %v67_v18 = vld [vmem:[#allocation5 + $0x58] sm:$0xff] }
  0x2b   :  { %344 = vmatprep.subr.bf16.mxu0 %v343_v5  ;;  %372 = vmatprep.subr.bf16.mxu1 %v343_v5  ;;  %v355_v16 = vpack.c.bf16 %v65_v15, %v64_v14  ;;  %v359_v19 = vpack.c.bf16 %v67_v18, %v66_v17  ;;  %v68_v20 = vld [vmem:[#allocation5 + $0x60] sm:$0xff]  ;;  %v69_v21 = vld [vmem:[#allocation5 + $0x68] sm:$0xff]  ;;  %v70_v23 = vld [vmem:[#allocation5 + $0x70] sm:$0xff]  ;;  %p443_p5 = por %p442_p4, %p441_p3 }
  0x2c   :  { %315 = vmatprep.mubr.f32.mxu0 %v40_v9  ;;  %327 = vmatprep.mubr.f32.mxu1 %v48_v10  ;;  %v363_v22 = vpack.c.bf16 %v69_v21, %v68_v20  ;;  %v71_v24 = vld [vmem:[#allocation5 + $0x78] sm:$0xff]  ;;  %v41_v26 = vld [vmem:[#allocation2 + $0x8] sm:$0xff]  ;;  %v42_v28 = vld [vmem:[#allocation2 + $0x10] sm:$0xff] }
  0x2d   :  { %v367_v25 = vpack.c.bf16 %v71_v24, %v70_v23  ;;  %v49_v27 = vld [vmem:[#allocation2 + $0x48] sm:$0xff]  ;;  %v50_v29 = vld [vmem:[#allocation2 + $0x50] sm:$0xff]  ;;  %v43_v30 = vld [vmem:[#allocation2 + $0x18] sm:$0xff]  ;;  %p444_p6 = pnand %p443_p5, %p437_p2 }
  0x2e   :  { %346 = vmatpush3.bf16.msra.mxu0 %v343_v5  ;;  %380 = vmatpush3.bf16.msra.mxu1 %v343_v5  ;;  %v51_v31 = vld [vmem:[#allocation2 + $0x58] sm:$0xff]  ;;  %v44_v32 = vld [vmem:[#allocation2 + $0x20] sm:$0xff]  ;;  %v45_v34 = vld [vmem:[#allocation2 + $0x28] sm:$0xff] }
  0x2f   :  { %348 = vmatprep.subr.bf16.mxu0 %v347_v8  ;;  %373 = vmatprep.subr.bf16.mxu1 %v347_v8  ;;  %v52_v33 = vld [vmem:[#allocation2 + $0x60] sm:$0xff]  ;;  %v53_v35 = vld [vmem:[#allocation2 + $0x68] sm:$0xff]  ;;  %v46_v36 = vld [vmem:[#allocation2 + $0x30] sm:$0xff] }
  0x30   :  { %v54_v37 = vld [vmem:[#allocation2 + $0x70] sm:$0xff]  ;;  %v47_v38 = vld [vmem:[#allocation2 + $0x38] sm:$0xff] }
  0x31   :  { %v55_v39 = vld [vmem:[#allocation2 + $0x78] sm:$0xff] }
  0x32   :  { %350 = vmatpush3.bf16.msra.mxu0 %v347_v8  ;;  %381 = vmatpush3.bf16.msra.mxu1 %v347_v8 }
  0x33   :  { %352 = vmatprep.subr.bf16.mxu0 %v351_v13  ;;  %374 = vmatprep.subr.bf16.mxu1 %v351_v13 }
  0x36   :  { %354 = vmatpush3.bf16.msra.mxu0 %v351_v13  ;;  %382 = vmatpush3.bf16.msra.mxu1 %v351_v13 }
  0x37   :  { %356 = vmatprep.subr.bf16.mxu0 %v355_v16  ;;  %375 = vmatprep.subr.bf16.mxu1 %v355_v16 }
  0x3a   :  { %358 = vmatpush3.bf16.msra.mxu0 %v355_v16  ;;  %383 = vmatpush3.bf16.msra.mxu1 %v355_v16 }
  0x3b   :  { %360 = vmatprep.subr.bf16.mxu0 %v359_v19  ;;  %376 = vmatprep.subr.bf16.mxu1 %v359_v19 }
  0x3e   :  { %362 = vmatpush3.bf16.msra.mxu0 %v359_v19  ;;  %384 = vmatpush3.bf16.msra.mxu1 %v359_v19 }
  0x3f   :  { %364 = vmatprep.subr.bf16.mxu0 %v363_v22  ;;  %377 = vmatprep.subr.bf16.mxu1 %v363_v22 }
  0x42   :  { %366 = vmatpush3.bf16.msra.mxu0 %v363_v22  ;;  %385 = vmatpush3.bf16.msra.mxu1 %v363_v22 }
  0x43   :  { %368 = vmatprep.subr.bf16.mxu0 %v367_v25  ;;  %378 = vmatprep.subr.bf16.mxu1 %v367_v25 }
  0x46   :  { %370 = vmatpush3.bf16.msra.mxu0 %v367_v25  ;;  %386 = vmatpush3.bf16.msra.mxu1 %v367_v25 }
  0x49   :  { %316 = vmatmul.mubr.f32.vlgmr.msra.gmra.mrb[0].mxu0 %v41_v26  ;;  %328 = vmatmul.mubr.f32.vlgmr.msra.gmra.mrb[0].mxu1 %v49_v27 }
  0x4a   :  { %318 = vmatprep.mubr.f32.mxu0 %v42_v28  ;;  %330 = vmatprep.mubr.f32.mxu1 %v50_v29 }
  0x4d   :  { %319 = vmatmul.mubr.f32.gmra.mrb[2].mxu0 %v43_v30  ;;  %331 = vmatmul.mubr.f32.gmra.mrb[2].mxu1 %v51_v31 }
  0x4e   :  { %321 = vmatprep.mubr.f32.mxu0 %v44_v32  ;;  %333 = vmatprep.mubr.f32.mxu1 %v52_v33 }
  0x51   :  { %322 = vmatmul.mubr.f32.gmra.mrb[4].mxu0 %v45_v34  ;;  %334 = vmatmul.mubr.f32.gmra.mrb[4].mxu1 %v53_v35 }
  0x52   :  { %324 = vmatprep.mubr.f32.mxu0 %v46_v36  ;;  %336 = vmatprep.mubr.f32.mxu1 %v54_v37 }
  0x55   :  { %325 = vmatmul.mubr.f32.gmra.mrb[6].mxu0 %v47_v38  ;;  %337 = vmatmul.mubr.f32.gmra.mrb[6].mxu1 %v55_v39 }
 0x11c   :  { %v317_v40 = vpop.f32.mrb[0].mxu0  ;;  %v329_v41 = vpop.f32.mrb[0].mxu1 }
 0x11d   :  { %218 = vst [vmem:[#allocation7 + $0x8] sm:$0xff] %v317_v40  ;;  %226 = vst [vmem:[#allocation7 + $0x48] sm:$0xff] %v329_v41  ;;  %v138_v42 = vpop.f32.mrb[1].mxu0  ;;  %v178_v43 = vpop.f32.mrb[1].mxu1 }
 0x11e   :  { %217 = vst [vmem:[#allocation7] sm:$0xff] %v138_v42  ;;  %225 = vst [vmem:[#allocation7 + $0x40] sm:$0xff] %v178_v43 }
 0x120   :  { %v320_v44 = vpop.f32.mrb[2].mxu0  ;;  %v332_v45 = vpop.f32.mrb[2].mxu1 }
 0x121   :  { %220 = vst [vmem:[#allocation7 + $0x18] sm:$0xff] %v320_v44  ;;  %228 = vst [vmem:[#allocation7 + $0x58] sm:$0xff] %v332_v45  ;;  %v148_v46 = vpop.f32.mrb[3].mxu0  ;;  %v188_v47 = vpop.f32.mrb[3].mxu1 }
 0x122   :  { %219 = vst [vmem:[#allocation7 + $0x10] sm:$0xff] %v148_v46  ;;  %227 = vst [vmem:[#allocation7 + $0x50] sm:$0xff] %v188_v47 }
 0x124   :  { %v323_v48 = vpop.f32.mrb[4].mxu0  ;;  %v335_v49 = vpop.f32.mrb[4].mxu1 }
 0x125   :  { %222 = vst [vmem:[#allocation7 + $0x28] sm:$0xff] %v323_v48  ;;  %230 = vst [vmem:[#allocation7 + $0x68] sm:$0xff] %v335_v49  ;;  %v158_v50 = vpop.f32.mrb[5].mxu0  ;;  %v198_v51 = vpop.f32.mrb[5].mxu1 }
 0x126   :  { %221 = vst [vmem:[#allocation7 + $0x20] sm:$0xff] %v158_v50  ;;  %229 = vst [vmem:[#allocation7 + $0x60] sm:$0xff] %v198_v51 }
 0x128   :  { %v326_v52 = vpop.f32.mrb[6].mxu0  ;;  %v338_v53 = vpop.f32.mrb[6].mxu1 }
 0x129   :  { %224 = vst [vmem:[#allocation7 + $0x38] sm:$0xff] %v326_v52  ;;  %232 = vst [vmem:[#allocation7 + $0x78] sm:$0xff] %v338_v53  ;;  %v168_v54 = vpop.f32.mrb[7].mxu0  ;;  %v208_v55 = vpop.f32.mrb[7].mxu1 }
 0x12a   :  { %223 = vst [vmem:[#allocation7 + $0x30] sm:$0xff] %v168_v54  ;;  %231 = vst [vmem:[#allocation7 + $0x70] sm:$0xff] %v208_v55 }
 0x12b   :  { %447 = shalt.err (!%p444_p6)
}
 0x12c   :  { %s448_s10 = scalar_lea.hbm %s531_s2, 2048 }
 0x12d   :  { %p449_p7 = scmp.ne.s32.totalorder %s531_s2, %s448_s10  ;;  %p452_p8 = scmp.lt.u32.totalorder %s448_s10, %s531_s2 }
 0x12f   :  { %p454_p9 = pnand %p452_p8, %p449_p7 }
 0x131   :  { %457 = shalt.err (!%p454_p9)
}
 0x132   :  { %244 = dma.vmem_to_hbm [thread:$0]  %s239_s6, 2048, %s531_s2, [#allocation4], %s465_s19, %s465_s19, %s466_s20  }
 0x133   :  { %462 = dma.done.wait [#allocation4], 2048  }
 0x134   :  { %463 = vsyncadd [#allocation4], 4294965248 }
 0x135   :  { %248 = vsyncpa [#allocation3], 1 }
 0x136   :  { %249 = vsyncpa [#allocation6], 1 }
 0x137   :  { %250 = vsyncpa [#allocation4], 1 }

</bundles_post_ra>
